<compile_context>
chip_gen: v6e
topology: v6e:2x2x1
jax: 0.10.0
libtpu: 0.0.40
codegen_flags: <defaults>
</compile_context>

<pallas_src>
import jax
import jax.numpy as jnp
from jax import lax
from jax.experimental import pallas as pl
from jax.experimental.pallas import tpu as pltpu

EPS_RMS = 1e-6
EPS_ACT = 1e-5

IN_FEATURES = 28 * 28   # 1*1*28*28, fixed by the module
W1 = 64                 # network_width1
W2 = 64                 # network_width2
W3 = 64                 # network_width3 (>0, so fc3 path is taken)
OUT = 10
OUT_PAD = 128           # lane-dense output block; real logits are [:, :OUT]

MAX_TB = 512            # batch tile (rows); multiple of 8, fits VMEM easily


def _round_up(n, m):
    return ((n + m - 1) // m) * m


def _bitlinear_q(x, w_sign, alpha):
    """BitLinear forward on pre-binarized weights.

    x:      (TB, in)  f32 activations
    w_sign: (in, out) bf16, values in {-1, 0, +1} (= sign(w - mean(w)))
    alpha:  scalar f32 per-tensor weight scale (= mean(|w|))
    """
    # RMSNorm (no learnable gain) via EUP rsqrt.
    ms = jnp.mean(x * x, axis=-1, keepdims=True)
    xn = x * lax.rsqrt(ms + EPS_RMS)
    # Per-row 8-bit activation quantization. Keep the integer grid for the
    # matmul; the de-scale (amax/127) and alpha are applied after the matmul,
    # so no wide-tensor divide appears on the VPU critical path.
    amax = jnp.maximum(jnp.max(jnp.abs(xn), axis=-1, keepdims=True), EPS_ACT)
    a_scale = 127.0 / amax                                   # (TB, 1) only
    x_int = jnp.clip(jnp.round(xn * a_scale), -128.0, 127.0)
    # bf16 MXU matmul, exact f32 accumulation (|sums| < 784*128 << 2^24).
    acc = jnp.dot(x_int.astype(jnp.bfloat16), w_sign,
                  preferred_element_type=jnp.float32)
    return acc * ((alpha * (1.0 / 127.0)) * amax)            # == acc*alpha/a_scale


def fcmnist_kernel(alphas_ref, x_ref, w1_ref, w2_ref, w3_ref, wl_ref, out_ref):
    x = x_ref[...]
    h1 = jnp.maximum(_bitlinear_q(x, w1_ref[...], alphas_ref[0]), 0.0)   # fc1+ReLU
    h2 = jnp.maximum(_bitlinear_q(h1, w2_ref[...], alphas_ref[1]), 0.0)  # fc2+ReLU
    h3 = jnp.maximum(_bitlinear_q(h2, w3_ref[...], alphas_ref[2]), 0.0)  # fc3+ReLU
    out_ref[...] = _bitlinear_q(h3, wl_ref[...], alphas_ref[3])          # fcl


def _quantize_weights(params):
    """Per-tensor binary weight quantization, hoisted out of the kernel.

    Returns ([sign matrices (in, out) bf16], alphas f32[4]); the fcl sign
    matrix is zero-padded to OUT_PAD output lanes (padded columns stay 0).
    """
    signs, alphas = [], []
    for w in params:                        # PyTorch layout (out, in)
        w_t = w.T.astype(jnp.float32)       # (in, out)
        alphas.append(jnp.mean(jnp.abs(w_t)))
        signs.append(jnp.sign(w_t - jnp.mean(w_t)))   # matches torch.sign
    signs[3] = jnp.pad(signs[3], ((0, 0), (0, OUT_PAD - OUT)))
    signs = [s.astype(jnp.bfloat16) for s in signs]   # +-1/0 exact in bf16
    alphas = jnp.stack(alphas).astype(jnp.float32)    # (4,)
    return signs, alphas


def fcmnist_forward(x_nchw, params):
    """x_nchw: (B, 1, 28, 28) float32. Returns (B, 10) float32 logits."""
    b = x_nchw.shape[0]
    x2d = x_nchw.reshape(b, -1).astype(jnp.float32)    # x.view(B, -1)
    (w1_s, w2_s, w3_s, wl_s), alphas = _quantize_weights(params)

    # Batch tile: multiple of 8 sublanes, capped so (2x double-buffered) f32
    # tiles stay far below every generation's VMEM (incl. v7x's 64 MiB).
    tb = MAX_TB if b >= MAX_TB else _round_up(b, 8)
    b_pad = _round_up(b, tb)
    if b_pad != b:
        x2d = jnp.pad(x2d, ((0, b_pad - b), (0, 0)))   # zero rows stay zero

    weight_spec = lambda shp: pl.BlockSpec(shp, lambda i: (0, 0))

    out = pl.pallas_call(
        fcmnist_kernel,
        out_shape=jax.ShapeDtypeStruct((b_pad, OUT_PAD), jnp.float32),
        grid=(b_pad // tb,),
        in_specs=[
            pl.BlockSpec(memory_space=pltpu.MemorySpace.SMEM),   # alphas (4,)
            pl.BlockSpec((tb, IN_FEATURES), lambda i: (i, 0)),   # x batch tile
            weight_spec((IN_FEATURES, W1)),
            weight_spec((W1, W2)),
            weight_spec((W2, W3)),
            weight_spec((W3, OUT_PAD)),
        ],
        out_specs=pl.BlockSpec((tb, OUT_PAD), lambda i: (i, 0)),
        compiler_params=pltpu.CompilerParams(
            dimension_semantics=("parallel",),
            vmem_limit_bytes=32 * 1024 * 1024,
        ),
    )(alphas, x2d, w1_s, w2_s, w3_s, wl_s)
    return out[:b, :OUT]


def init_params(key):
    """Deterministic nn.Linear-style init: U(-1/sqrt(fan_in), 1/sqrt(fan_in)).
    Weight shapes follow PyTorch convention (out_features, in_features)."""
    shapes = [(W1, IN_FEATURES), (W2, W1), (W3, W2), (OUT, W3)]
    keys = jax.random.split(key, len(shapes))
    params = []
    for k, (fout, fin) in zip(keys, shapes):
        bound = 1.0 / (fin ** 0.5)
        params.append(jax.random.uniform(k, (fout, fin), jnp.float32,
                                         minval=-bound, maxval=bound))
    return tuple(params)


if __name__ == "__main__":
    key = jax.random.PRNGKey(0)
    k_x, k_p = jax.random.split(key)
    # Small batch; spatial shape fixed by the module (28x28 flattened to 784).
    x = jax.random.normal(k_x, (2, 1, 28, 28), dtype=jnp.float32)
    params = init_params(k_p)

    logits = jax.jit(fcmnist_forward)(x, params)
    jax.block_until_ready(logits)
    assert logits.shape == (2, OUT) and logits.dtype == jnp.float32
    print("KERNEL_OK")
</pallas_src>

<mosaic_0001>
module attributes {stable_mosaic.version = 11 : i64} {
  func.func @fcmnist_kernel(%arg0: i32, %arg1: memref<4xf32, #tpu.memory_space<smem>>, %arg2: memref<8x784xf32, #tpu.memory_space<vmem>>, %arg3: memref<784x64xbf16, #tpu.memory_space<vmem>>, %arg4: memref<64x64xbf16, #tpu.memory_space<vmem>>, %arg5: memref<64x64xbf16, #tpu.memory_space<vmem>>, %arg6: memref<64x128xbf16, #tpu.memory_space<vmem>>, %arg7: memref<8x128xf32, #tpu.memory_space<vmem>>) attributes {dimension_semantics = [#tpu.dimension_semantics<parallel>], iteration_bounds = array<i64: 1>, scalar_prefetch = 0 : i64, scratch_operands = 0 : i64, tpu.core_type = #tpu.core_type<tc>, window_params = [{transform_indices = @transform_0, window_bounds = array<i64: 4>}, {transform_indices = @transform_1, window_bounds = array<i64: 8, 784>}, {pipeline_mode = #tpu.pipeline_mode<synchronous>, transform_indices = @transform_2, window_bounds = array<i64: 784, 64>}, {pipeline_mode = #tpu.pipeline_mode<synchronous>, transform_indices = @transform_3, window_bounds = array<i64: 64, 64>}, {pipeline_mode = #tpu.pipeline_mode<synchronous>, transform_indices = @transform_4, window_bounds = array<i64: 64, 64>}, {pipeline_mode = #tpu.pipeline_mode<synchronous>, transform_indices = @transform_5, window_bounds = array<i64: 64, 128>}, {transform_indices = @transform_6, window_bounds = array<i64: 8, 128>}]} {
    %c0 = arith.constant 0 : index
    %c0_0 = arith.constant 0 : index
    %0 = vector.load %arg2[%c0, %c0_0] : memref<8x784xf32, #tpu.memory_space<vmem>>, vector<8x784xf32>
    %c0_1 = arith.constant 0 : index
    %c0_2 = arith.constant 0 : index
    %1 = vector.load %arg3[%c0_1, %c0_2] : memref<784x64xbf16, #tpu.memory_space<vmem>>, vector<784x64xbf16>
    %c0_3 = arith.constant 0 : index
    %2 = memref.load %arg1[%c0_3] : memref<4xf32, #tpu.memory_space<smem>>
    %3 = arith.mulf %0, %0 : vector<8x784xf32>
    %cst = arith.constant dense<0.000000e+00> : vector<8xf32>
    %4 = vector.multi_reduction <add>, %3, %cst [1] : vector<8x784xf32> to vector<8xf32>
    %5 = vector.shape_cast %4 : vector<8xf32> to vector<8x1xf32>
    %cst_4 = arith.constant 7.840000e+02 : f32
    %6 = vector.broadcast %cst_4 : f32 to vector<8x1xf32>
    %7 = arith.divf %5, %6 : vector<8x1xf32>
    %cst_5 = arith.constant 9.99999997E-7 : f32
    %8 = vector.broadcast %cst_5 : f32 to vector<8x1xf32>
    %9 = arith.addf %7, %8 : vector<8x1xf32>
    %10 = math.rsqrt %9 : vector<8x1xf32>
    %11 = vector.broadcast %10 : vector<8x1xf32> to vector<8x784xf32>
    %12 = arith.mulf %0, %11 : vector<8x784xf32>
    %13 = math.absf %12 : vector<8x784xf32>
    %cst_6 = arith.constant dense<0xFF800000> : vector<8xf32>
    %14 = vector.multi_reduction <maximumf>, %13, %cst_6 [1] : vector<8x784xf32> to vector<8xf32>
    %15 = vector.shape_cast %14 : vector<8xf32> to vector<8x1xf32>
    %cst_7 = arith.constant 9.99999974E-6 : f32
    %16 = vector.broadcast %cst_7 : f32 to vector<8x1xf32>
    %17 = arith.maximumf %15, %16 : vector<8x1xf32>
    %cst_8 = arith.constant 1.270000e+02 : f32
    %18 = vector.broadcast %cst_8 : f32 to vector<8x1xf32>
    %19 = arith.divf %18, %17 : vector<8x1xf32>
    %20 = vector.broadcast %19 : vector<8x1xf32> to vector<8x784xf32>
    %21 = arith.mulf %12, %20 : vector<8x784xf32>
    %22 = math.roundeven %21 : vector<8x784xf32>
    %cst_9 = arith.constant -1.280000e+02 : f32
    %cst_10 = arith.constant 1.270000e+02 : f32
    %23 = vector.broadcast %cst_9 : f32 to vector<8x784xf32>
    %24 = arith.maximumf %23, %22 : vector<8x784xf32>
    %25 = vector.broadcast %cst_10 : f32 to vector<8x784xf32>
    %26 = arith.minimumf %25, %24 : vector<8x784xf32>
    %27 = arith.truncf %26 : vector<8x784xf32> to vector<8x784xbf16>
    %cst_11 = arith.constant dense<0.000000e+00> : vector<8x64xf32>
    %28 = tpu.matmul %27, %1, %cst_11 {dimension_numbers = #tpu.dot_dimension_numbers<[1], [0], [0], [1], [0, 0, 1, 1], [], []>} : vector<8x784xbf16>, vector<784x64xbf16>, vector<8x64xf32> -> vector<8x64xf32>
    %cst_12 = arith.constant 0.00787401571 : f32
    %29 = arith.mulf %2, %cst_12 : f32
    %30 = vector.broadcast %29 : f32 to vector<8x1xf32>
    %31 = arith.mulf %30, %17 : vector<8x1xf32>
    %32 = vector.broadcast %31 : vector<8x1xf32> to vector<8x64xf32>
    %33 = arith.mulf %28, %32 : vector<8x64xf32>
    %cst_13 = arith.constant 0.000000e+00 : f32
    %34 = vector.broadcast %cst_13 : f32 to vector<8x64xf32>
    %35 = arith.maximumf %33, %34 : vector<8x64xf32>
    %c0_14 = arith.constant 0 : index
    %c0_15 = arith.constant 0 : index
    %36 = vector.load %arg4[%c0_14, %c0_15] : memref<64x64xbf16, #tpu.memory_space<vmem>>, vector<64x64xbf16>
    %c1 = arith.constant 1 : index
    %37 = memref.load %arg1[%c1] : memref<4xf32, #tpu.memory_space<smem>>
    %38 = arith.mulf %35, %35 : vector<8x64xf32>
    %cst_16 = arith.constant dense<0.000000e+00> : vector<8xf32>
    %39 = vector.multi_reduction <add>, %38, %cst_16 [1] : vector<8x64xf32> to vector<8xf32>
    %40 = vector.shape_cast %39 : vector<8xf32> to vector<8x1xf32>
    %cst_17 = arith.constant 6.400000e+01 : f32
    %41 = vector.broadcast %cst_17 : f32 to vector<8x1xf32>
    %42 = arith.divf %40, %41 : vector<8x1xf32>
    %cst_18 = arith.constant 9.99999997E-7 : f32
    %43 = vector.broadcast %cst_18 : f32 to vector<8x1xf32>
    %44 = arith.addf %42, %43 : vector<8x1xf32>
    %45 = math.rsqrt %44 : vector<8x1xf32>
    %46 = vector.broadcast %45 : vector<8x1xf32> to vector<8x64xf32>
    %47 = arith.mulf %35, %46 : vector<8x64xf32>
    %48 = math.absf %47 : vector<8x64xf32>
    %cst_19 = arith.constant dense<0xFF800000> : vector<8xf32>
    %49 = vector.multi_reduction <maximumf>, %48, %cst_19 [1] : vector<8x64xf32> to vector<8xf32>
    %50 = vector.shape_cast %49 : vector<8xf32> to vector<8x1xf32>
    %cst_20 = arith.constant 9.99999974E-6 : f32
    %51 = vector.broadcast %cst_20 : f32 to vector<8x1xf32>
    %52 = arith.maximumf %50, %51 : vector<8x1xf32>
    %cst_21 = arith.constant 1.270000e+02 : f32
    %53 = vector.broadcast %cst_21 : f32 to vector<8x1xf32>
    %54 = arith.divf %53, %52 : vector<8x1xf32>
    %55 = vector.broadcast %54 : vector<8x1xf32> to vector<8x64xf32>
    %56 = arith.mulf %47, %55 : vector<8x64xf32>
    %57 = math.roundeven %56 : vector<8x64xf32>
    %cst_22 = arith.constant -1.280000e+02 : f32
    %cst_23 = arith.constant 1.270000e+02 : f32
    %58 = vector.broadcast %cst_22 : f32 to vector<8x64xf32>
    %59 = arith.maximumf %58, %57 : vector<8x64xf32>
    %60 = vector.broadcast %cst_23 : f32 to vector<8x64xf32>
    %61 = arith.minimumf %60, %59 : vector<8x64xf32>
    %62 = arith.truncf %61 : vector<8x64xf32> to vector<8x64xbf16>
    %cst_24 = arith.constant dense<0.000000e+00> : vector<8x64xf32>
    %63 = tpu.matmul %62, %36, %cst_24 {dimension_numbers = #tpu.dot_dimension_numbers<[1], [0], [0], [1], [0, 0, 1, 1], [], []>} : vector<8x64xbf16>, vector<64x64xbf16>, vector<8x64xf32> -> vector<8x64xf32>
    %cst_25 = arith.constant 0.00787401571 : f32
    %64 = arith.mulf %37, %cst_25 : f32
    %65 = vector.broadcast %64 : f32 to vector<8x1xf32>
    %66 = arith.mulf %65, %52 : vector<8x1xf32>
    %67 = vector.broadcast %66 : vector<8x1xf32> to vector<8x64xf32>
    %68 = arith.mulf %63, %67 : vector<8x64xf32>
    %cst_26 = arith.constant 0.000000e+00 : f32
    %69 = vector.broadcast %cst_26 : f32 to vector<8x64xf32>
    %70 = arith.maximumf %68, %69 : vector<8x64xf32>
    %c0_27 = arith.constant 0 : index
    %c0_28 = arith.constant 0 : index
    %71 = vector.load %arg5[%c0_27, %c0_28] : memref<64x64xbf16, #tpu.memory_space<vmem>>, vector<64x64xbf16>
    %c2 = arith.constant 2 : index
    %72 = memref.load %arg1[%c2] : memref<4xf32, #tpu.memory_space<smem>>
    %73 = arith.mulf %70, %70 : vector<8x64xf32>
    %cst_29 = arith.constant dense<0.000000e+00> : vector<8xf32>
    %74 = vector.multi_reduction <add>, %73, %cst_29 [1] : vector<8x64xf32> to vector<8xf32>
    %75 = vector.shape_cast %74 : vector<8xf32> to vector<8x1xf32>
    %cst_30 = arith.constant 6.400000e+01 : f32
    %76 = vector.broadcast %cst_30 : f32 to vector<8x1xf32>
    %77 = arith.divf %75, %76 : vector<8x1xf32>
    %cst_31 = arith.constant 9.99999997E-7 : f32
    %78 = vector.broadcast %cst_31 : f32 to vector<8x1xf32>
    %79 = arith.addf %77, %78 : vector<8x1xf32>
    %80 = math.rsqrt %79 : vector<8x1xf32>
    %81 = vector.broadcast %80 : vector<8x1xf32> to vector<8x64xf32>
    %82 = arith.mulf %70, %81 : vector<8x64xf32>
    %83 = math.absf %82 : vector<8x64xf32>
    %cst_32 = arith.constant dense<0xFF800000> : vector<8xf32>
    %84 = vector.multi_reduction <maximumf>, %83, %cst_32 [1] : vector<8x64xf32> to vector<8xf32>
    %85 = vector.shape_cast %84 : vector<8xf32> to vector<8x1xf32>
    %cst_33 = arith.constant 9.99999974E-6 : f32
    %86 = vector.broadcast %cst_33 : f32 to vector<8x1xf32>
    %87 = arith.maximumf %85, %86 : vector<8x1xf32>
    %cst_34 = arith.constant 1.270000e+02 : f32
    %88 = vector.broadcast %cst_34 : f32 to vector<8x1xf32>
    %89 = arith.divf %88, %87 : vector<8x1xf32>
    %90 = vector.broadcast %89 : vector<8x1xf32> to vector<8x64xf32>
    %91 = arith.mulf %82, %90 : vector<8x64xf32>
    %92 = math.roundeven %91 : vector<8x64xf32>
    %cst_35 = arith.constant -1.280000e+02 : f32
    %cst_36 = arith.constant 1.270000e+02 : f32
    %93 = vector.broadcast %cst_35 : f32 to vector<8x64xf32>
    %94 = arith.maximumf %93, %92 : vector<8x64xf32>
    %95 = vector.broadcast %cst_36 : f32 to vector<8x64xf32>
    %96 = arith.minimumf %95, %94 : vector<8x64xf32>
    %97 = arith.truncf %96 : vector<8x64xf32> to vector<8x64xbf16>
    %cst_37 = arith.constant dense<0.000000e+00> : vector<8x64xf32>
    %98 = tpu.matmul %97, %71, %cst_37 {dimension_numbers = #tpu.dot_dimension_numbers<[1], [0], [0], [1], [0, 0, 1, 1], [], []>} : vector<8x64xbf16>, vector<64x64xbf16>, vector<8x64xf32> -> vector<8x64xf32>
    %cst_38 = arith.constant 0.00787401571 : f32
    %99 = arith.mulf %72, %cst_38 : f32
    %100 = vector.broadcast %99 : f32 to vector<8x1xf32>
    %101 = arith.mulf %100, %87 : vector<8x1xf32>
    %102 = vector.broadcast %101 : vector<8x1xf32> to vector<8x64xf32>
    %103 = arith.mulf %98, %102 : vector<8x64xf32>
    %cst_39 = arith.constant 0.000000e+00 : f32
    %104 = vector.broadcast %cst_39 : f32 to vector<8x64xf32>
    %105 = arith.maximumf %103, %104 : vector<8x64xf32>
    %c0_40 = arith.constant 0 : index
    %c0_41 = arith.constant 0 : index
    %106 = vector.load %arg6[%c0_40, %c0_41] : memref<64x128xbf16, #tpu.memory_space<vmem>>, vector<64x128xbf16>
    %c3 = arith.constant 3 : index
    %107 = memref.load %arg1[%c3] : memref<4xf32, #tpu.memory_space<smem>>
    %108 = arith.mulf %105, %105 : vector<8x64xf32>
    %cst_42 = arith.constant dense<0.000000e+00> : vector<8xf32>
    %109 = vector.multi_reduction <add>, %108, %cst_42 [1] : vector<8x64xf32> to vector<8xf32>
    %110 = vector.shape_cast %109 : vector<8xf32> to vector<8x1xf32>
    %cst_43 = arith.constant 6.400000e+01 : f32
    %111 = vector.broadcast %cst_43 : f32 to vector<8x1xf32>
    %112 = arith.divf %110, %111 : vector<8x1xf32>
    %cst_44 = arith.constant 9.99999997E-7 : f32
    %113 = vector.broadcast %cst_44 : f32 to vector<8x1xf32>
    %114 = arith.addf %112, %113 : vector<8x1xf32>
    %115 = math.rsqrt %114 : vector<8x1xf32>
    %116 = vector.broadcast %115 : vector<8x1xf32> to vector<8x64xf32>
    %117 = arith.mulf %105, %116 : vector<8x64xf32>
    %118 = math.absf %117 : vector<8x64xf32>
    %cst_45 = arith.constant dense<0xFF800000> : vector<8xf32>
    %119 = vector.multi_reduction <maximumf>, %118, %cst_45 [1] : vector<8x64xf32> to vector<8xf32>
    %120 = vector.shape_cast %119 : vector<8xf32> to vector<8x1xf32>
    %cst_46 = arith.constant 9.99999974E-6 : f32
    %121 = vector.broadcast %cst_46 : f32 to vector<8x1xf32>
    %122 = arith.maximumf %120, %121 : vector<8x1xf32>
    %cst_47 = arith.constant 1.270000e+02 : f32
    %123 = vector.broadcast %cst_47 : f32 to vector<8x1xf32>
    %124 = arith.divf %123, %122 : vector<8x1xf32>
    %125 = vector.broadcast %124 : vector<8x1xf32> to vector<8x64xf32>
    %126 = arith.mulf %117, %125 : vector<8x64xf32>
    %127 = math.roundeven %126 : vector<8x64xf32>
    %cst_48 = arith.constant -1.280000e+02 : f32
    %cst_49 = arith.constant 1.270000e+02 : f32
    %128 = vector.broadcast %cst_48 : f32 to vector<8x64xf32>
    %129 = arith.maximumf %128, %127 : vector<8x64xf32>
    %130 = vector.broadcast %cst_49 : f32 to vector<8x64xf32>
    %131 = arith.minimumf %130, %129 : vector<8x64xf32>
    %132 = arith.truncf %131 : vector<8x64xf32> to vector<8x64xbf16>
    %cst_50 = arith.constant dense<0.000000e+00> : vector<8x128xf32>
    %133 = tpu.matmul %132, %106, %cst_50 {dimension_numbers = #tpu.dot_dimension_numbers<[1], [0], [0], [1], [0, 0, 1, 1], [], []>} : vector<8x64xbf16>, vector<64x128xbf16>, vector<8x128xf32> -> vector<8x128xf32>
    %cst_51 = arith.constant 0.00787401571 : f32
    %134 = arith.mulf %107, %cst_51 : f32
    %135 = vector.broadcast %134 : f32 to vector<8x1xf32>
    %136 = arith.mulf %135, %122 : vector<8x1xf32>
    %137 = vector.broadcast %136 : vector<8x1xf32> to vector<8x128xf32>
    %138 = arith.mulf %133, %137 : vector<8x128xf32>
    %c0_52 = arith.constant 0 : index
    %c0_53 = arith.constant 0 : index
    %139 = vector.load %arg7[%c0_52, %c0_53] : memref<8x128xf32, #tpu.memory_space<vmem>>, vector<8x128xf32>
    tpu.vector_store %arg7[%c0_52, %c0_53], %138 {strides = array<i32>} : memref<8x128xf32, #tpu.memory_space<vmem>>, vector<8x128xf32>,
    return
  }
  func.func @transform_0(%arg0: i32) -> i32 {
    %c0_i32 = arith.constant 0 : i32
    %c0_i32_0 = arith.constant 0 : i32
    return %c0_i32 : i32
  }
  func.func @transform_1(%arg0: i32) -> (i32, i32) {
    %c0_i32 = arith.constant 0 : i32
    %c0_i32_0 = arith.constant 0 : i32
    return %arg0, %c0_i32 : i32, i32
  }
  func.func @transform_2(%arg0: i32) -> (i32, i32) {
    %c0_i32 = arith.constant 0 : i32
    %c0_i32_0 = arith.constant 0 : i32
    %c0_i32_1 = arith.constant 0 : i32
    return %c0_i32, %c0_i32_0 : i32, i32
  }
  func.func @transform_3(%arg0: i32) -> (i32, i32) {
    %c0_i32 = arith.constant 0 : i32
    %c0_i32_0 = arith.constant 0 : i32
    %c0_i32_1 = arith.constant 0 : i32
    return %c0_i32, %c0_i32_0 : i32, i32
  }
  func.func @transform_4(%arg0: i32) -> (i32, i32) {
    %c0_i32 = arith.constant 0 : i32
    %c0_i32_0 = arith.constant 0 : i32
    %c0_i32_1 = arith.constant 0 : i32
    return %c0_i32, %c0_i32_0 : i32, i32
  }
  func.func @transform_5(%arg0: i32) -> (i32, i32) {
    %c0_i32 = arith.constant 0 : i32
    %c0_i32_0 = arith.constant 0 : i32
    %c0_i32_1 = arith.constant 0 : i32
    return %c0_i32, %c0_i32_0 : i32, i32
  }
  func.func @transform_6(%arg0: i32) -> (i32, i32) {
    %c0_i32 = arith.constant 0 : i32
    %c0_i32_0 = arith.constant 0 : i32
    return %arg0, %c0_i32 : i32, i32
  }
}

</mosaic_0001>

<bundles_post_ra>
// kernel: fcmnist_forward.1
= control target key start
LH: loop header
LB: loop body
LE: loop exit
PB: predicated region body
PF: predicated region fallthrough
CT: control target
= control target key end

     0   :  { %11 = vsyncpa [#allocation3], 0  ;;  %s1725_s0 = inlined_call_operand.vmem [shape: f32[4], index: 0, kind: input, shape index: {}]   ;;  %s1726_s1 = inlined_call_operand.vmem [shape: f32[8,784], index: 1, kind: input, shape index: {}]   ;;  %s1727_s2 = inlined_call_operand.vmem [shape: bf16[784,64], index: 2, kind: input, shape index: {}]   ;;  %s1728_s3 = inlined_call_operand.vmem [shape: bf16[64,64], index: 3, kind: input, shape index: {}]   ;;  %s1729_s4 = inlined_call_operand.vmem [shape: bf16[64,64], index: 4, kind: input, shape index: {}]   ;;  %s1730_s5 = inlined_call_operand.vmem [shape: bf16[64,128], index: 5, kind: input, shape index: {}]   ;;  %s1731_s6 = inlined_call_operand.vmem [shape: f32[8,128], index: 6, kind: output, shape index: {}]  }
   0x1   :  { %s18_s23 = sshll.u32 %s1725_s0, 4  ;;  %s19_s23 = int_to_ptr.vmem [resolvable:$true] %s18_s23 }
   0x2   :  { %s1350_s24 = scalar_lea.vmem %s19_s23, 16  ;;  %p1355_p1 = scmp.lt.s32.totalorder %s19_s23, %s19_s23 }
   0x3   :  { %p1351_p0 = scmp.ne.s32.totalorder %s19_s23, %s1350_s24  ;;  %p1356_p2 = scmp.lt.s32.totalorder %s1350_s24, %s1350_s24 }
   0x5   :  { %p1357_p3 = por %p1356_p2, %p1355_p1 }
   0x7   :  { %p1358_p4 = pnand %p1357_p3, %p1351_p0 }
   0x9   :  { %1361 = shalt.err (!%p1358_p4)
}
   0xa   :  { %s1364_s25 = smov [#allocation2]  }
   0xb   :  { %21 = dma.vmem_to_smem %s19_s23, 16, %s1364_s25, [#allocation3]  }
   0xc   :  { %1362 = dma.done.wait [#allocation3], 16  }
   0xd   :  { %1363 = vsyncadd [#allocation3], 4294967280 }
   0xe   :  { %35 = sfence }
   0xf   :  { %v37_v0 = vld [vmem:[%s1726_s1] sm:$0xff]  ;;  %v38_v1 = vld [vmem:[%s1726_s1 + $0x8] sm:$0xff]  ;;  %v39_v2 = vld [vmem:[%s1726_s1 + $0x10] sm:$0xff]  ;;  %vm155_vm0 = vcmask 130048   ;;  %vm1366_vm7 = vmmov 0   ;;  %vm697_vm9 = vcmask 523264  }
  0x10   :  { %v40_v3 = vld [vmem:[%s1726_s1 + $0x18] sm:$0xff]  ;;  %v41_v4 = vld [vmem:[%s1726_s1 + $0x20] sm:$0xff]  ;;  %v143_v5 = vmul.f32 %v37_v0, %v37_v0  ;;  %v144_v6 = vmul.f32 %v38_v1, %v38_v1  ;;  %v145_v7 = vmul.f32 %v39_v2, %v39_v2  ;;  %v42_v8 = vld [vmem:[%s1726_s1 + $0x28] sm:$0xff] }
  0x11   :  { %v43_v9 = vld [vmem:[%s1726_s1 + $0x30] sm:$0xff]  ;;  %v146_v10 = vmul.f32 %v40_v3, %v40_v3  ;;  %v147_v13 = vmul.f32 %v41_v4, %v41_v4  ;;  %v148_v16 = vmul.f32 %v42_v8, %v42_v8  ;;  %v1273_v46 = vld [vmem:[%s1727_s2 + $0x78] sm:$0xff]   ;;  %v1281_v54 = vld [vmem:[%s1727_s2 + $0x68] sm:$0xff]  }
  0x12   :  { %v149_v11 = vmul.f32 %v43_v9, %v43_v9  ;;  %v150_v12 = vadd.f32 %v144_v6, %v143_v5  ;;  %v1274_v47 = vld [vmem:[%s1727_s2 + $0x38] sm:$0xff]   ;;  %1065 = vmatprep.subr.bf16.mxu0 %v1273_v46  ;;  %v1277_v50 = vld [vmem:[%s1727_s2 + $0x70] sm:$0xff]   ;;  %v1282_v55 = vld [vmem:[%s1727_s2 + $0x28] sm:$0xff]  }
  0x13   :  { %v1275_v48 = vld [vmem:[%s1727_s2 + $0xf8] sm:$0xff]   ;;  %1066 = vmatpush3.bf16.msra.mxu0 %v1274_v47  ;;  %v1278_v51 = vld [vmem:[%s1727_s2 + $0x30] sm:$0xff]   ;;  %v1283_v56 = vld [vmem:[%s1727_s2 + $0xe8] sm:$0xff]  }
  0x14   :  { %v151_v14 = vadd.f32 %v150_v12, %v145_v7  ;;  %v156_v15 = vsel %vm155_vm0, %v149_v11, 0.0  ;;  %v1276_v49 = vld [vmem:[%s1727_s2 + $0xb8] sm:$0xff]   ;;  %1087 = vmatprep.subr.bf16.mxu1 %v1275_v48  ;;  %v1279_v52 = vld [vmem:[%s1727_s2 + $0xf0] sm:$0xff]   ;;  %1067 = vmatprep.subr.bf16.mxu0 %v1277_v50  ;;  %v1284_v57 = vld [vmem:[%s1727_s2 + $0xa8] sm:$0xff]  }
  0x15   :  { %1088 = vmatpush3.bf16.msra.mxu1 %v1276_v49  ;;  %v1280_v53 = vld [vmem:[%s1727_s2 + $0xb0] sm:$0xff]   ;;  %v1285_v58 = vld [vmem:[%s1727_s2 + $0x60] sm:$0xff]   ;;  %v1289_v62 = vld [vmem:[%s1727_s2 + $0x58] sm:$0xff]  }
  0x16   :  { %v152_v17 = vadd.f32 %v151_v14, %v146_v10  ;;  %1089 = vmatprep.subr.bf16.mxu1 %v1279_v52  ;;  %v1286_v59 = vld [vmem:[%s1727_s2 + $0x20] sm:$0xff]   ;;  %v1290_v63 = vld [vmem:[%s1727_s2 + $0x18] sm:$0xff]   ;;  %v1296_v5 = vld [vmem:[%s1727_s2 + $0x90] sm:$0xff]  }
  0x17   :  { %1068 = vmatpush3.bf16.msra.mxu0 %v1278_v51  ;;  %v1287_v60 = vld [vmem:[%s1727_s2 + $0xe0] sm:$0xff]   ;;  %v1297_v6 = vld [vmem:[%s1727_s2 + $0x48] sm:$0xff]   ;;  %v1305_v14 = vld [vmem:[%s1727_s2 + $0x178] sm:$0xff]  }
  0x18   :  { %v153_v18 = vadd.f32 %v152_v17, %v147_v13  ;;  %1069 = vmatprep.subr.bf16.mxu0 %v1281_v54  ;;  %v1288_v61 = vld [vmem:[%s1727_s2 + $0xa0] sm:$0xff]   ;;  %v1299_v7 = vld [vmem:[%s1727_s2 + $0xc8] sm:$0xff]  }
  0x19   :  { %1090 = vmatpush3.bf16.msra.mxu1 %v1280_v53  ;;  %v1301_v10 = vld [vmem:[%s1727_s2 + $0x40] sm:$0xff]  }
  0x1a   :  { %v154_v19 = vadd.f32 %v153_v18, %v148_v16  ;;  %1091 = vmatprep.subr.bf16.mxu1 %v1283_v56  ;;  %v1303_v11 = vld [vmem:[%s1727_s2 + $0xc0] sm:$0xff]  }
  0x1b   :  { %1070 = vmatpush3.bf16.msra.mxu0 %v1282_v55  ;;  %v1302_v12 = vld [vmem:[%s1727_s2] sm:$0xff]  }
  0x1c   :  { %v157_v20 = vadd.f32 %v156_v15, %v154_v19  ;;  %1071 = vmatprep.subr.bf16.mxu0 %v1285_v58  ;;  %v1304_v13 = vld [vmem:[%s1727_s2 + $0x80] sm:$0xff]   ;;  %v1365_v15 = vmov 0.0  }
  0x1d   :  { %1092 = vmatpush3.bf16.msra.mxu1 %v1284_v57 }
  0x1e   :  { %158 = vadd.xlane.f32.xlu0 %v157_v20  ;;  %1093 = vmatprep.subr.bf16.mxu1 %v1287_v60 }
  0x1f   :  { %1072 = vmatpush3.bf16.msra.mxu0 %v1286_v59 }
  0x20   :  { %1073 = vmatprep.subr.bf16.mxu0 %v1289_v62 }
  0x21   :  { %1094 = vmatpush3.bf16.msra.mxu1 %v1288_v61 }
  0x23   :  { %1074 = vmatpush3.bf16.msra.mxu0 %v1290_v63 }
  0xa7   :  { %v159_v21 = vpop.xlane.xlu0 %158 }
  0xa8   :  { %v161_v22 = vmul.f32 0.0012755102, %v159_v21 }
  0xaa   :  { %v162_v23 = vadd.f32 1e-06, %v161_v22 }
  0xac   :  { %1334 = vrsqrt.f32 %v162_v23 }
  0xb9   :  { %v1335_v24 = vpop.eup %1334 }
  0xba   :  { %v1427_v25 = vmul.f32 %v1335_v24, %v37_v0  ;;  %v1429_v26 = vmul.f32 %v1335_v24, %v38_v1  ;;  %v1431_v27 = vmul.f32 %v1335_v24, %v39_v2  ;;  %v1433_v28 = vmul.f32 %v1335_v24, %v41_v4  ;;  %v1291_v0 = vld [vmem:[%s1727_s2 + $0xd8] sm:$0xff]   ;;  %v1293_v2 = vld [vmem:[%s1727_s2 + $0x50] sm:$0xff]  }
  0xbb   :  { %v1435_v29 = vmul.f32 %v1335_v24, %v42_v8  ;;  %v1437_v30 = vmul.f32 %v1335_v24, %v43_v9  ;;  %v1441_v33 = vmul.f32 %v1335_v24, %v40_v3  ;;  %v1292_v1 = vld [vmem:[%s1727_s2 + $0x98] sm:$0xff]   ;;  %1095 = vmatprep.subr.bf16.mxu1 %v1291_v0  ;;  %v1295_v3 = vld [vmem:[%s1727_s2 + $0xd0] sm:$0xff]   ;;  %1075 = vmatprep.subr.bf16.mxu0 %v1293_v2  ;;  %v1298_v8 = vld [vmem:[%s1727_s2 + $0x8] sm:$0xff]  }
  0xbc   :  { %v171_v31 = vand.u32 2147483647, %v1427_v25  ;;  %v172_v32 = vand.u32 2147483647, %v1429_v26  ;;  %v173_v34 = vand.u32 2147483647, %v1431_v27  ;;  %1096 = vmatpush3.bf16.msra.mxu1 %v1292_v1 }
  0xbd   :  { %v175_v35 = vand.u32 2147483647, %v1433_v28  ;;  %v176_v36 = vand.u32 2147483647, %v1435_v29  ;;  %v177_v37 = vand.u32 2147483647, %v1437_v30  ;;  %1097 = vmatprep.subr.bf16.mxu1 %v1295_v3 }
  0xbe   :  { %v174_v41 = vand.u32 2147483647, %v1441_v33  ;;  %v1294_v4 = vld [vmem:[%s1727_s2 + $0x10] sm:$0xff]   ;;  %v1300_v9 = vld [vmem:[%s1727_s2 + $0x88] sm:$0xff]  }
  0xbf   :  { %v178_v38 = vmax.f32.f32 %v171_v31, %v175_v35  ;;  %v179_v39 = vmax.f32.f32 %v172_v32, %v176_v36  ;;  %v180_v40 = vsel %vm155_vm0, %v177_v37, -inf  ;;  %1076 = vmatpush3.bf16.msra.mxu0 %v1294_v4 }
  0xc0   :  { %v181_v42 = vmax.f32 %v173_v34, %v180_v40  ;;  %1098 = vmatpush3.bf16.msra.mxu1 %v1296_v5  ;;  %1077 = vmatprep.subr.bf16.mxu0 %v1297_v6 }
  0xc1   :  { %v182_v43 = vmax.f32.f32 %v178_v38, %v179_v39  ;;  %1099 = vmatprep.subr.bf16.mxu1 %v1299_v7 }
  0xc2   :  { %v183_v44 = vmax.f32 %v181_v42, %v174_v41 }
  0xc3   :  { %1078 = vmatpush3.bf16.msra.mxu0 %v1298_v8 }
  0xc4   :  { %v184_v45 = vmax.f32 %v182_v43, %v183_v44  ;;  %1100 = vmatpush3.bf16.msra.mxu1 %v1300_v9  ;;  %1079 = vmatprep.subr.bf16.mxu0 %v1301_v10  ;;  %v1313_v43 = vld [vmem:[%s1727_s2 + $0x120] sm:$0xff]  }
  0xc5   :  { %1101 = vmatprep.subr.bf16.mxu1 %v1303_v11 }
  0xc6   :  { %185 = vmax.xlane.f32.xlu0 %v184_v45 }
  0xc7   :  { %1080 = vmatpush3.bf16.msra.mxu0 %v1302_v12 }
  0xc8   :  { %1102 = vmatpush3.bf16.msra.mxu1 %v1304_v13  ;;  %1109 = vmatprep.subr.bf16.mxu0 %v1305_v14  ;;  %v1306_v14 = vld [vmem:[%s1727_s2 + $0x138] sm:$0xff]  }
  0xc9   :  { %1148 = vmatprep.subr.bf16.mxu1 %v1365_v15 }
 0x14f   :  { %v1549_v16 = vpop.xlane.xlu0 %185 }
 0x150   :  { %v187_v17 = vmax.f32 %v1549_v16, 1e-05  ;;  %v1322_v16 = vld [vmem:[%s1728_s3 + $0x18] sm:$0xff]  }
 0x152   :  { %1336 = vrcp.f32 %v187_v17 }
 0x15f   :  { %v1337_v18 = vpop.eup %1336 }
 0x160   :  { %v1554_v19 = vmul.f32 127.0, %v1337_v18 }
 0x162   :  { %v191_v20 = vmul.f32 %v1554_v19, %v1429_v26  ;;  %v193_v21 = vmul.f32 %v1554_v19, %v1441_v33  ;;  %v190_v22 = vmul.f32 %v1554_v19, %v1427_v25  ;;  %v192_v23 = vmul.f32 %v1554_v19, %v1431_v27 }
 0x163   :  { %v195_v37 = vmul.f32 %v1554_v19, %v1435_v29  ;;  %v1568_v33 = vmul.f32 %v1554_v19, %v1437_v30 }
 0x164   :  { %v1198_v24 = vand.u32 2147483647, %v191_v20  ;;  %v1200_v31 = vcvt.f32.s32 %v191_v20  ;;  %v1214_v32 = vand.u32 2147483647, %v193_v21  ;;  %v1216_v34 = vcvt.f32.s32 %v193_v21 }
 0x165   :  { %v1190_v35 = vand.u32 2147483647, %v190_v22  ;;  %v1192_v36 = vcvt.f32.s32 %v190_v22  ;;  %v1203_v26 = vand.u32 2147483648, %v191_v20  ;;  %v1219_v39 = vand.u32 2147483648, %v193_v21 }
 0x166   :  { %v1201_v38 = vcvt.s32.f32 %v1200_v31  ;;  %vm1570_vm1 = vcmp.lt.f32.partialorder %v1198_v24, 8388608.0  ;;  %v1217_v27 = vcvt.s32.f32 %v1216_v34  ;;  %v1206_v41 = vand.u32 2147483647, %v192_v23  ;;  %v1307_v31 = vld [vmem:[%s1727_s2 + $0x170] sm:$0xff]  }
 0x167   :  { %v1193_v40 = vcvt.s32.f32 %v1192_v36  ;;  %vm1574_vm2 = vcmp.lt.f32.partialorder %v1214_v32, 8388608.0  ;;  %v1195_v29 = vand.u32 2147483648, %v190_v22  ;;  %v1208_v44 = vcvt.f32.s32 %v192_v23  ;;  %v1309_v36 = vld [vmem:[%s1727_s2 + $0x180] sm:$0xff]  }
 0x168   :  { %v1202_v42 = vand.u32 2147483647, %v1201_v38  ;;  %v1218_v45 = vand.u32 2147483647, %v1217_v27  ;;  %vm1578_vm3 = vcmp.lt.f32.partialorder %v1190_v35, 8388608.0  ;;  %v1232_v47 = vcvt.f32.s32 %v195_v37  ;;  %v1308_v38 = vld [vmem:[%s1727_s2 + $0x130] sm:$0xff]  }
 0x169   :  { %v1194_v30 = vand.u32 2147483647, %v1193_v40  ;;  %v1209_v49 = vcvt.s32.f32 %v1208_v44  ;;  %v1211_v50 = vand.u32 2147483648, %v192_v23  ;;  %v1230_v51 = vand.u32 2147483647, %v195_v37  ;;  %v1312_v40 = vld [vmem:[%s1727_s2 + $0x160] sm:$0xff]  }
 0x16a   :  { %v1204_v48 = vor.u32 %v1203_v26, %v1202_v42  ;;  %v1220_v52 = vor.u32 %v1219_v39, %v1218_v45  ;;  %vm1582_vm4 = vcmp.lt.f32.partialorder %v1206_v41, 8388608.0  ;;  %v1233_v55 = vcvt.s32.f32 %v1232_v47  ;;  %v1315_v45 = vld [vmem:[%s1727_s2 + $0x118] sm:$0xff]  }
 0x16b   :  { %v1196_v53 = vor.u32 %v1195_v29, %v1194_v30  ;;  %v1210_v57 = vand.u32 2147483647, %v1209_v49  ;;  %v1235_v58 = vand.u32 2147483648, %v195_v37  ;;  %v1240_v59 = vcvt.f32.s32 %v1568_v33  ;;  %v1314_v29 = vld [vmem:[%s1727_s2 + $0x158] sm:$0xff]   ;;  %v1316_v30 = vld [vmem:[%s1727_s2 + $0x150] sm:$0xff]  }
 0x16c   :  { %v1205_v56 = vsel %vm1570_vm1, %v1204_v48, %v191_v20  ;;  %v1221_v61 = vsel %vm1574_vm2, %v1220_v52, %v193_v21  ;;  %v1234_v63 = vand.u32 2147483647, %v1233_v55  ;;  %vm1593_vm5 = vcmp.lt.f32.partialorder %v1230_v51, 8388608.0  ;;  %v1317_v49 = vld [vmem:[%s1727_s2 + $0x110] sm:$0xff]   ;;  %v1319_v52 = vld [vmem:[%s1727_s2 + $0x108] sm:$0xff]   ;;  %v1321_v55 = vld [vmem:[%s1727_s2 + $0x100] sm:$0xff]  }
 0x16d   :  { %v205_v60 = vmax.f32 %v1205_v56, -128.0  ;;  %v1197_v62 = vsel %vm1578_vm3, %v1196_v53, %v190_v22  ;;  %v207_v0 = vmax.f32 %v1221_v61, -128.0  ;;  %v1212_v2 = vor.u32 %v1211_v50, %v1210_v57  ;;  %v1318_v50 = vld [vmem:[%s1727_s2 + $0x148] sm:$0xff]   ;;  %v1320_v53 = vld [vmem:[%s1727_s2 + $0x140] sm:$0xff]  }
 0x16e   :  { %v204_v1 = vmax.f32 %v1197_v62, -128.0  ;;  %v1236_v5 = vor.u32 %v1235_v58, %v1234_v63  ;;  %v1238_v6 = vand.u32 2147483647, %v1568_v33  ;;  %v1241_v7 = vcvt.s32.f32 %v1240_v59 }
 0x16f   :  { %v212_v4 = vmin.f32 %v205_v60, 127.0  ;;  %v214_v8 = vmin.f32 %v207_v0, 127.0  ;;  %v1213_v10 = vsel %vm1582_vm4, %v1212_v2, %v192_v23  ;;  %v1243_v11 = vand.u32 2147483648, %v1568_v33 }
 0x170   :  { %v211_v9 = vmin.f32 %v204_v1, 127.0  ;;  %v206_v13 = vmax.f32 %v1213_v10, -128.0  ;;  %v1237_v18 = vsel %vm1593_vm5, %v1236_v5, %v195_v37  ;;  %v1242_v20 = vand.u32 2147483647, %v1241_v7 }
 0x171   :  { %v219_v12 = vpack.c.bf16 %v212_v4, %v212_v4  ;;  %v221_v21 = vpack.c.bf16 %v214_v8, %v214_v8  ;;  %v209_v24 = vmax.f32 %v1237_v18, -128.0  ;;  %v194_v34 = vmul.f32 %v1554_v19, %v1433_v28  ;;  %v1310_v28 = vld [vmem:[%s1727_s2 + $0x168] sm:$0xff]  }
 0x172   :  { %v218_v22 = vpack.c.bf16 %v211_v9, %v211_v9  ;;  %v213_v23 = vmin.f32 %v206_v13, 127.0  ;;  %v1244_v32 = vor.u32 %v1243_v11, %v1242_v20  ;;  %vm1239_vm6 = vcmp.lt.f32.partialorder %v1238_v6, 8388608.0 }
 0x173   :  { %554 = vmatprep.mubr.bf16.mxu0 %v219_v12  ;;  %594 = vmatprep.mubr.bf16.mxu1 %v221_v21  ;;  %v216_v35 = vmin.f32 %v209_v24, 127.0  ;;  %v1224_v25 = vcvt.f32.s32 %v194_v34  ;;  %v1227_v46 = vand.u32 2147483648, %v194_v34  ;;  %v1222_v47 = vand.u32 2147483647, %v194_v34 }
 0x174   :  { %555 = vmatmul.mubr.bf16.vlgmr.msra.gmra.mxu0 %v218_v22  ;;  %v220_v37 = vpack.c.bf16 %v213_v23, %v213_v23  ;;  %v1245_v26 = vsel %vm1239_vm6, %v1244_v32, %v1568_v33  ;;  %v1311_v33 = vld [vmem:[%s1727_s2 + $0x128] sm:$0xff]   ;;  %s142_s2 = sld [smem:[#allocation2]] }
 0x175   :  { %1110 = vmatpush3.bf16.msra.mxu0 %v1306_v14  ;;  %v223_v39 = vpack.c.bf16 %v216_v35, %v216_v35  ;;  %v210_v19 = vmax.f32 %v1245_v26, -128.0  ;;  %v1225_v41 = vcvt.s32.f32 %v1224_v25  ;;  %vm1223_vm8 = vcmp.lt.f32.partialorder %v1222_v47, 8388608.0 }
 0x176   :  { %1111 = vmatprep.subr.bf16.mxu0 %v1307_v31  ;;  %595 = vmatmul.mubr.bf16.vlgmr.msra.gmra.mxu1 %v220_v37 }
 0x177   :  { %634 = vmatprep.mubr.bf16.mxu0 %v223_v39  ;;  %1149 = vmatpush3.bf16.msra.mxu1 %v1309_v36  ;;  %v217_v27 = vmin.f32 %v210_v19, 127.0  ;;  %v1226_v44 = vand.u32 2147483647, %v1225_v41  ;;  %v1324_v39 = vld [vmem:[%s1728_s3 + $0x8] sm:$0xff]  }
 0x178   :  { %1150 = vmatprep.mubr.msk.bf16.mxu1 %vm1366_vm7, %v1365_v15  ;;  %1154 = vmatprep.subr.bf16.mxu1 %v1365_v15 }
 0x179   :  { %1112 = vmatpush3.bf16.msra.mxu0 %v1308_v38  ;;  %v224_v42 = vpack.c.bf16 %v217_v27, %v217_v27  ;;  %v1228_v48 = vor.u32 %v1227_v46, %v1226_v44 }
 0x17a   :  { %1113 = vmatprep.subr.bf16.mxu0 %v1310_v28  ;;  %s682_s9 = smul.f32 0.007874016, %s142_s2  ;;  %v1325_v28 = vld [vmem:[%s1728_s3] sm:$0xff]  }
 0x17b   :  { %v1229_v51 = vsel %vm1223_vm8, %v1228_v48, %v194_v34 }
 0x17c   :  { %v208_v54 = vmax.f32 %v1229_v51, -128.0  ;;  %v683_v12 = vstv %s682_s9 }
 0x17d   :  { %1114 = vmatpush3.bf16.msra.mxu0 %v1311_v33  ;;  %v684_v20 = vmul.f32 %v683_v12, %v187_v17  ;;  %v1323_v17 = vld [vmem:[%s1728_s3 + $0x10] sm:$0xff]   ;;  %s1047_s3 = sld [smem:[#allocation2 + $0x1]] }
 0x17e   :  { %1115 = vmatprep.subr.bf16.mxu0 %v1312_v40  ;;  %1151 = vmatmul.mubr.msk.bf16.vlgmr.msra.gmra.mxu1 %vm155_vm0, %v224_v42  ;;  %v215_v56 = vmin.f32 %v208_v54, 127.0 }
 0x17f   :  { %1162 = vmatprep.mubr.msk.bf16.mxu1 %vm1366_vm7, %v1365_v15  ;;  %1155 = vmatpush3.bf16.msra.mxu1 %v1322_v16 }
 0x180   :  { %v222_v57 = vpack.c.bf16 %v215_v56, %v215_v56  ;;  %1156 = vmatprep.subr.bf16.mxu1 %v1365_v15 }
 0x181   :  { %1116 = vmatpush3.bf16.msra.mxu0 %v1313_v43 }
 0x182   :  { %1117 = vmatprep.subr.bf16.mxu0 %v1314_v29 }
 0x183   :  { %1157 = vmatpush3.bf16.msra.mxu1 %v1323_v17  ;;  %s785_s17 = smul.f32 0.007874016, %s1047_s3 }
 0x184   :  { %1158 = vmatprep.subr.bf16.mxu1 %v1365_v15 }
 0x185   :  { %1118 = vmatpush3.bf16.msra.mxu0 %v1315_v45 }
 0x186   :  { %1119 = vmatprep.subr.bf16.mxu0 %v1316_v30 }
 0x187   :  { %1159 = vmatpush3.bf16.msra.mxu1 %v1324_v39 }
 0x188   :  { %1160 = vmatprep.subr.bf16.mxu1 %v1365_v15 }
 0x189   :  { %1120 = vmatpush3.bf16.msra.mxu0 %v1317_v49  ;;  %v786_v49 = vstv %s785_s17 }
 0x18a   :  { %1121 = vmatprep.subr.bf16.mxu0 %v1318_v50 }
 0x18b   :  { %1161 = vmatpush3.bf16.msra.mxu1 %v1325_v28 }
 0x18c   :  { %1166 = vmatprep.subr.bf16.mxu1 %v1365_v15 }
 0x18d   :  { %1122 = vmatpush3.bf16.msra.mxu0 %v1319_v52 }
 0x18e   :  { %1123 = vmatprep.subr.bf16.mxu0 %v1320_v53 }
 0x191   :  { %1124 = vmatpush3.bf16.msra.mxu0 %v1321_v55 }
 0x192   :  { %1178 = vmatprep.subr.bf16.mxu0 %v1365_v15 }
 0x194   :  { %635 = vmatmul.mubr.bf16.vlgmr.msra.gmra.mxu0 %v222_v57 }
 0x195   :  { %1186 = vmatprep.mubr.msk.bf16.mxu0 %vm1366_vm7, %v1365_v15 }
 0x234   :  { %v1081_v58 = vpop.f32.mrf.mxu0 }
 0x236   :  { %v1082_v59 = vpop.f32.mrf.mxu0  ;;  %v1103_v60 = vpop.f32.mrf.mxu1 }
 0x237   :  { %v1083_v6 = vadd.f32 %v1082_v59, %v1081_v58 }
 0x238   :  { %v1084_v61 = vpop.f32.mrf.mxu0  ;;  %v1104_v62 = vpop.f32.mrf.mxu1 }
 0x239   :  { %v1105_v7 = vadd.f32 %v1104_v62, %v1103_v60 }
 0x23a   :  { %v1085_v63 = vpop.f32.mrf.mxu0  ;;  %v1106_v0 = vpop.f32.mrf.mxu1 }
 0x23b   :  { %v597_v10 = vadd.f32 %v1105_v7, %v1083_v6 }
 0x23c   :  { %v1107_v1 = vpop.f32.mrf.mxu1 }
 0x23e   :  { %v676_v2 = vpop.f32.mrf.mxu1 }
 0x240   :  { %v1152_v3 = vpop.f32.mrf.mxu1 }
 0x241   :  { %v1327_v3 = vld [vmem:[%s1729_s4 + $0x10] sm:$0xff]  }
 0x242   :  { %v679_v4 = vpop.f32.mrf.mxu1 }
 0x243   :  { %v1328_v4 = vld [vmem:[%s1729_s4 + $0x8] sm:$0xff]  }
 0x244   :  { %v1153_v5 = vpop.f32.mrf.mxu1 }
 0x245   :  { %v1329_v5 = vld [vmem:[%s1729_s4] sm:$0xff]  }
 0x254   :  { %v1125_v8 = vpop.f32.mrf.mxu0 }
 0x256   :  { %v1126_v9 = vpop.f32.mrf.mxu0 }
 0x257   :  { %v1127_v11 = vadd.f32 %v1126_v9, %v1125_v8 }
 0x258   :  { %v1128_v13 = vpop.f32.mrf.mxu0 }
 0x259   :  { %v637_v14 = vadd.f32 %v1127_v11, %v597_v10 }
 0x25a   :  { %v1129_v18 = vpop.f32.mrf.mxu0 }
 0x25b   :  { %v677_v21 = vadd.f32 %v676_v2, %v637_v14  ;;  %v1326_v2 = vld [vmem:[%s1729_s4 + $0x18] sm:$0xff]   ;;  %s1053_s4 = sld [smem:[#allocation2 + $0x2]] }
 0x25d   :  { %v685_v22 = vmul.f32 %v684_v20, %v677_v21 }
 0x25f   :  { %v686_v24 = vmax.f32 %v685_v22, 0.0 }
 0x261   :  { %v696_v31 = vmul.f32 %v686_v24, %v686_v24  ;;  %s886_s26 = smul.f32 0.007874016, %s1053_s4 }
 0x263   :  { %v698_v23 = vsel %vm697_vm9, %v696_v31, 0.0 }
 0x264   :  { %699 = vadd.xlane.f32.xlu1 %v698_v23  ;;  %v887_v23 = vstv %s886_s26 }
 0x2ed   :  { %v700_v32 = vpop.xlane.xlu1 %699 }
 0x2ee   :  { %v702_v34 = vmul.f32 0.015625, %v700_v32 }
 0x2f0   :  { %v703_v35 = vadd.f32 1e-06, %v702_v34 }
 0x2f2   :  { %1338 = vrsqrt.f32 %v703_v35 }
 0x2ff   :  { %v1339_v36 = vpop.eup %1338 }
 0x300   :  { %v705_v37 = vmul.f32 %v1339_v36, %v686_v24 }
 0x302   :  { %v706_v38 = vand.u32 2147483647, %v705_v37 }
 0x304   :  { %v707_v26 = vsel %vm697_vm9, %v706_v38, -inf }
 0x305   :  { %708 = vmax.xlane.f32.xlu1 %v707_v26 }
 0x38e   :  { %v709_v19 = vpop.xlane.xlu1 %708 }
 0x38f   :  { %v710_v25 = vmax.f32 %v709_v19, 1e-05 }
 0x391   :  { %1340 = vrcp.f32 %v710_v25  ;;  %v787_v50 = vmul.f32 %v786_v49, %v710_v25 }
 0x39e   :  { %v1341_v33 = vpop.eup %1340 }
 0x39f   :  { %v712_v27 = vmul.f32 127.0, %v1341_v33 }
 0x3a1   :  { %v713_v40 = vmul.f32 %v712_v27, %v705_v37 }
 0x3a3   :  { %v1248_v41 = vcvt.f32.s32 %v713_v40  ;;  %v1246_v43 = vand.u32 2147483647, %v713_v40  ;;  %v1251_v44 = vand.u32 2147483648, %v713_v40 }
 0x3a5   :  { %v1249_v42 = vcvt.s32.f32 %v1248_v41  ;;  %vm1247_vm10 = vcmp.lt.f32.partialorder %v1246_v43, 8388608.0  ;;  %v1330_v41 = vld [vmem:[%s1730_s5 + $0x18] sm:$0xff]   ;;  %v1332_v43 = vld [vmem:[%s1730_s5 + $0x8] sm:$0xff]  }
 0x3a6   :  { %1179 = vmatpush3.bf16.msra.mxu0 %v1330_v41 }
 0x3a7   :  { %v1250_v29 = vand.u32 2147483647, %v1249_v42  ;;  %v1331_v42 = vld [vmem:[%s1730_s5 + $0x10] sm:$0xff]   ;;  %1180 = vmatprep.subr.bf16.mxu0 %v1365_v15 }
 0x3a9   :  { %v1252_v45 = vor.u32 %v1251_v44, %v1250_v29  ;;  %v1333_v29 = vld [vmem:[%s1730_s5] sm:$0xff]   ;;  %s1059_s5 = sld [smem:[#allocation2 + $0x3]] }
 0x3aa   :  { %1181 = vmatpush3.bf16.msra.mxu0 %v1331_v42 }
 0x3ab   :  { %v1253_v46 = vsel %vm1247_vm10, %v1252_v45, %v713_v40  ;;  %1182 = vmatprep.subr.bf16.mxu0 %v1365_v15 }
 0x3ac   :  { %v715_v30 = vmax.f32 %v1253_v46, -128.0 }
 0x3ae   :  { %v716_v47 = vmin.f32 %v715_v30, 127.0  ;;  %1183 = vmatpush3.bf16.msra.mxu0 %v1332_v43 }
 0x3af   :  { %1184 = vmatprep.subr.bf16.mxu0 %v1365_v15  ;;  %s987_s9 = smul.f32 0.007874016, %s1059_s5 }
 0x3b0   :  { %v717_v48 = vpack.c.bf16 %v716_v47, %v716_v47 }
 0x3b2   :  { %1163 = vmatmul.mubr.msk.bf16.vlgmr.msra.gmra.mxu1 %vm697_vm9, %v717_v48  ;;  %1185 = vmatpush3.bf16.msra.mxu0 %v1333_v29 }
 0x3b3   :  { %1174 = vmatprep.mubr.msk.bf16.mxu1 %vm1366_vm7, %v1365_v15  ;;  %1167 = vmatpush3.bf16.msra.mxu1 %v1326_v2 }
 0x3b4   :  { %1168 = vmatprep.subr.bf16.mxu1 %v1365_v15 }
 0x3b7   :  { %1169 = vmatpush3.bf16.msra.mxu1 %v1327_v3 }
 0x3b8   :  { %1170 = vmatprep.subr.bf16.mxu1 %v1365_v15 }
 0x3bb   :  { %1171 = vmatpush3.bf16.msra.mxu1 %v1328_v4 }
 0x3bc   :  { %1172 = vmatprep.subr.bf16.mxu1 %v1365_v15  ;;  %v988_v15 = vstv %s987_s9 }
 0x3bf   :  { %1173 = vmatpush3.bf16.msra.mxu1 %v1329_v5 }
 0x472   :  { %v779_v51 = vpop.f32.mrf.mxu1 }
 0x473   :  { %v788_v52 = vmul.f32 %v787_v50, %v779_v51 }
 0x474   :  { %v1164_v53 = vpop.f32.mrf.mxu1 }
 0x475   :  { %v789_v54 = vmax.f32 %v788_v52, 0.0 }
 0x476   :  { %v782_v55 = vpop.f32.mrf.mxu1 }
 0x477   :  { %v799_v56 = vmul.f32 %v789_v54, %v789_v54 }
 0x478   :  { %v1165_v57 = vpop.f32.mrf.mxu1 }
 0x479   :  { %v800_v58 = vsel %vm697_vm9, %v799_v56, 0.0 }
 0x47a   :  { %801 = vadd.xlane.f32.xlu0 %v800_v58 }
 0x503   :  { %v802_v59 = vpop.xlane.xlu0 %801 }
 0x504   :  { %v803_v60 = vmul.f32 0.015625, %v802_v59 }
 0x506   :  { %v804_v61 = vadd.f32 1e-06, %v803_v60 }
 0x508   :  { %1342 = vrsqrt.f32 %v804_v61 }
 0x515   :  { %v1343_v62 = vpop.eup %1342 }
 0x516   :  { %v806_v63 = vmul.f32 %v1343_v62, %v789_v54 }
 0x518   :  { %v807_v0 = vand.u32 2147483647, %v806_v63 }
 0x51a   :  { %v808_v1 = vsel %vm697_vm9, %v807_v0, -inf }
 0x51b   :  { %809 = vmax.xlane.f32.xlu1 %v808_v1 }
 0x5a4   :  { %v810_v6 = vpop.xlane.xlu1 %809 }
 0x5a5   :  { %v811_v7 = vmax.f32 %v810_v6, 1e-05 }
 0x5a7   :  { %1344 = vrcp.f32 %v811_v7  ;;  %v888_v32 = vmul.f32 %v887_v23, %v811_v7 }
 0x5b4   :  { %v1345_v8 = vpop.eup %1344 }
 0x5b5   :  { %v813_v9 = vmul.f32 127.0, %v1345_v8 }
 0x5b7   :  { %v814_v10 = vmul.f32 %v813_v9, %v806_v63 }
 0x5b9   :  { %v1256_v11 = vcvt.f32.s32 %v814_v10  ;;  %v1254_v13 = vand.u32 2147483647, %v814_v10  ;;  %v1259_v18 = vand.u32 2147483648, %v814_v10 }
 0x5bb   :  { %v1257_v12 = vcvt.s32.f32 %v1256_v11  ;;  %vm1255_vm11 = vcmp.lt.f32.partialorder %v1254_v13, 8388608.0 }
 0x5bd   :  { %v1258_v14 = vand.u32 2147483647, %v1257_v12 }
 0x5bf   :  { %v1260_v20 = vor.u32 %v1259_v18, %v1258_v14 }
 0x5c1   :  { %v1261_v21 = vsel %vm1255_vm11, %v1260_v20, %v814_v10 }
 0x5c2   :  { %v816_v22 = vmax.f32 %v1261_v21, -128.0 }
 0x5c4   :  { %v817_v24 = vmin.f32 %v816_v22, 127.0 }
 0x5c6   :  { %v818_v31 = vpack.c.bf16 %v817_v24, %v817_v24 }
 0x5c8   :  { %1175 = vmatmul.mubr.msk.bf16.vlgmr.msra.gmra.mxu1 %vm697_vm9, %v818_v31 }
 0x688   :  { %v880_v34 = vpop.f32.mrf.mxu1 }
 0x689   :  { %v889_v35 = vmul.f32 %v888_v32, %v880_v34 }
 0x68a   :  { %v1176_v36 = vpop.f32.mrf.mxu1 }
 0x68b   :  { %v890_v37 = vmax.f32 %v889_v35, 0.0 }
 0x68c   :  { %v883_v38 = vpop.f32.mrf.mxu1 }
 0x68d   :  { %v900_v26 = vmul.f32 %v890_v37, %v890_v37 }
 0x68e   :  { %v1177_v16 = vpop.f32.mrf.mxu1 }
 0x68f   :  { %v901_v17 = vsel %vm697_vm9, %v900_v26, 0.0 }
 0x690   :  { %902 = vadd.xlane.f32.xlu0 %v901_v17 }
 0x719   :  { %v903_v39 = vpop.xlane.xlu0 %902 }
 0x71a   :  { %v904_v28 = vmul.f32 0.015625, %v903_v39 }
 0x71c   :  { %v905_v19 = vadd.f32 1e-06, %v904_v28 }
 0x71e   :  { %1346 = vrsqrt.f32 %v905_v19 }
 0x72b   :  { %v1347_v25 = vpop.eup %1346 }
 0x72c   :  { %v907_v33 = vmul.f32 %v1347_v25, %v890_v37 }
 0x72e   :  { %v908_v27 = vand.u32 2147483647, %v907_v33 }
 0x730   :  { %v909_v40 = vsel %vm697_vm9, %v908_v27, -inf }
 0x731   :  { %910 = vmax.xlane.f32.xlu1 %v909_v40 }
 0x7ba   :  { %v911_v44 = vpop.xlane.xlu1 %910 }
 0x7bb   :  { %v912_v45 = vmax.f32 %v911_v44, 1e-05 }
 0x7bd   :  { %1348 = vrcp.f32 %v912_v45  ;;  %v989_v58 = vmul.f32 %v988_v15, %v912_v45 }
 0x7ca   :  { %v1349_v46 = vpop.eup %1348 }
 0x7cb   :  { %v914_v30 = vmul.f32 127.0, %v1349_v46 }
 0x7cd   :  { %v915_v47 = vmul.f32 %v914_v30, %v907_v33 }
 0x7cf   :  { %v1264_v48 = vcvt.f32.s32 %v915_v47  ;;  %v1262_v50 = vand.u32 2147483647, %v915_v47  ;;  %v1267_v52 = vand.u32 2147483648, %v915_v47 }
 0x7d1   :  { %v1265_v49 = vcvt.s32.f32 %v1264_v48  ;;  %vm1263_vm12 = vcmp.lt.f32.partialorder %v1262_v50, 8388608.0 }
 0x7d3   :  { %v1266_v51 = vand.u32 2147483647, %v1265_v49 }
 0x7d5   :  { %v1268_v53 = vor.u32 %v1267_v52, %v1266_v51 }
 0x7d7   :  { %v1269_v54 = vsel %vm1263_vm12, %v1268_v53, %v915_v47 }
 0x7d8   :  { %v917_v55 = vmax.f32 %v1269_v54, -128.0 }
 0x7da   :  { %v918_v56 = vmin.f32 %v917_v55, 127.0 }
 0x7dc   :  { %v919_v57 = vpack.c.bf16 %v918_v56, %v918_v56 }
 0x7de   :  { %1187 = vmatmul.mubr.msk.bf16.vlgmr.msra.gmra.mxu0 %vm697_vm9, %v919_v57 }
 0x89e   :  { %v981_v59 = vpop.f32.mrf.mxu0 }
 0x89f   :  { %v990_v60 = vmul.f32 %v989_v58, %v981_v59 }
 0x8a0   :  { %v1188_v61 = vpop.f32.mrf.mxu0 }
 0x8a1   :  { %991 = vst [vmem:[%s1731_s6] sm:$0xff] %v990_v60 }
 0x8a2   :  { %v984_v62 = vpop.f32.mrf.mxu0 }
 0x8a4   :  { %v1189_v63 = vpop.f32.mrf.mxu0 }
 0x8a5   :  { %996 = vsyncpa [#allocation3], 1 }

</bundles_post_ra>
